<compile_context>
chip_gen: v7x
topology: tpu7x:2x2x1
jax: 0.10.0
libtpu: 0.0.40
codegen_flags: <defaults>
</compile_context>

<pallas_src>
import functools

import jax
import jax.numpy as jnp
from jax.experimental import pallas as pl
from jax.experimental.pallas import tpu as pltpu

LANE = 128  # TPU vreg lane width


def dqn_kernel(x_ref, w12_ref, w3_ref, b_ref, o_ref):
    # x_ref  : (TB, S)     f32
    # w12_ref: (S+H, H)    bf16   rows [0:S) = W1,  rows [S:S+H) = W2
    # w3_ref : (H, AP)     bf16   AP = action_size padded to a multiple of 128 lanes
    # b_ref  : (3, HP)     f32    row0 = b1[:H], row1 = b2[:H], row2 = b3 padded to AP
    # o_ref  : (TB, AP)    f32    lane-dense output slab
    s = x_ref.shape[1]
    h = w3_ref.shape[0]
    ap = o_ref.shape[1]

    x = x_ref[...].astype(jnp.bfloat16)          # bf16 MXU operand, f32 accumulate
    w1 = w12_ref[:s, :]
    w2 = w12_ref[s:, :]
    b1 = b_ref[0:1, :h]
    b2 = b_ref[1:2, :h]
    b3 = b_ref[2:3, :ap]

    # fc1 + ReLU  (bias/ReLU in f32 on the VPU)
    h1 = jnp.dot(x, w1, preferred_element_type=jnp.float32)
    h1 = jnp.maximum(h1 + b1, 0.0)
    # fc2 + ReLU
    h2 = jnp.dot(h1.astype(jnp.bfloat16), w2, preferred_element_type=jnp.float32)
    h2 = jnp.maximum(h2 + b2, 0.0)
    # fc3 (no activation -- Q-values), padded action columns are exact zeros
    q = jnp.dot(h2.astype(jnp.bfloat16), w3_ref[...],
                preferred_element_type=jnp.float32)
    o_ref[...] = (q + b3).astype(o_ref.dtype)


def prepare_dqn_params(params):
    """One-time layout prep.

    Transpose weights to (in, out), cast to bf16, concatenate W1/W2 into one
    slab, zero-pad W3 to a lane-dense (H, AP) layout, and pack all biases into
    a single (3, HP) f32 array.  Returns (arrays, meta)."""
    hidden, state_size = params["w1"].shape          # PyTorch layout (out, in)
    action_size = params["w3"].shape[0]
    a_pad = max(LANE, ((action_size + LANE - 1) // LANE) * LANE)
    hp = max(hidden, a_pad)

    w1t = params["w1"].T.astype(jnp.bfloat16)        # (S, H)
    w2t = params["w2"].T.astype(jnp.bfloat16)        # (H, H)
    w12 = jnp.concatenate([w1t, w2t], axis=0)        # (S+H, H)
    w3t = (jnp.zeros((hidden, a_pad), jnp.bfloat16)
           .at[:, :action_size].set(params["w3"].T.astype(jnp.bfloat16)))

    biases = jnp.zeros((3, hp), jnp.float32)
    biases = biases.at[0, :hidden].set(params["b1"].astype(jnp.float32))
    biases = biases.at[1, :hidden].set(params["b2"].astype(jnp.float32))
    biases = biases.at[2, :action_size].set(params["b3"].astype(jnp.float32))

    arrays = dict(w12=w12, w3=w3t, biases=biases)
    meta = dict(state_size=int(state_size), hidden=int(hidden),
                action_size=int(action_size), a_pad=int(a_pad))
    return arrays, meta


@functools.partial(jax.jit, static_argnames=("action_size",))
def dqn_forward(x, arrays, *, action_size):
    """x: (B, state_size) f32. arrays: prepare_dqn_params()[0]. -> (B, action_size) f32."""
    B, S = x.shape
    H, AP = arrays["w3"].shape
    assert arrays["w12"].shape == (S + H, H)

    # Batch tile: big enough to amortize ~0.35us per grid step, tiny vs VMEM
    # even on v7x (64 MiB physical / 32 MiB scoped): TB=1024 -> ~2.5 MiB live.
    TB = min(B, 1024)
    grid = (pl.cdiv(B, TB),)

    flops = 2 * B * (S * H + H * H + H * AP)
    bytes_accessed = (B * S * 4                       # x (f32 in)
                      + arrays["w12"].size * 2        # bf16 weights
                      + arrays["w3"].size * 2
                      + arrays["biases"].size * 4
                      + B * AP * 4)                   # padded Q output

    q_pad = pl.pallas_call(
        dqn_kernel,
        out_shape=jax.ShapeDtypeStruct((B, AP), jnp.float32),
        grid=grid,
        in_specs=[
            pl.BlockSpec((TB, S), lambda i: (i, 0)),              # x: streamed over batch
            pl.BlockSpec(arrays["w12"].shape, lambda i: (0, 0)),  # W1|W2 slab: VMEM-resident
            pl.BlockSpec((H, AP), lambda i: (0, 0)),              # W3 (lane-padded): resident
            pl.BlockSpec(arrays["biases"].shape, lambda i: (0, 0)),  # packed biases: resident
        ],
        out_specs=pl.BlockSpec((TB, AP), lambda i: (i, 0)),       # lane-dense (AP=128) store
        compiler_params=pltpu.CompilerParams(
            dimension_semantics=("parallel",),                    # lets v7x use both TCs
        ),
        cost_estimate=pl.CostEstimate(
            flops=flops, transcendentals=0, bytes_accessed=bytes_accessed),
    )(x, arrays["w12"], arrays["w3"], arrays["biases"])

    # Layout plumbing only: drop the zero-padded action lanes.
    return q_pad[:, :action_size]


def init_dqn_params(key, state_size, action_size, hidden=128):
    """Deterministic PyTorch-style (uniform +/- 1/sqrt(fan_in)) init, PyTorch layout."""
    def linear(k, out_f, in_f):
        kw, kb = jax.random.split(k)
        bound = 1.0 / jnp.sqrt(jnp.float32(in_f))
        w = jax.random.uniform(kw, (out_f, in_f), jnp.float32, -bound, bound)
        b = jax.random.uniform(kb, (out_f,), jnp.float32, -bound, bound)
        return w, b

    k1, k2, k3 = jax.random.split(key, 3)
    w1, b1 = linear(k1, hidden, state_size)
    w2, b2 = linear(k2, hidden, hidden)
    w3, b3 = linear(k3, action_size, hidden)
    return dict(w1=w1, b1=b1, w2=w2, b2=b2, w3=w3, b3=b3)


def dqn_reference_f32(x, params):
    """Pure-f32 PyTorch-equivalent reference."""
    h1 = jnp.maximum(x @ params["w1"].T + params["b1"], 0.0)
    h2 = jnp.maximum(h1 @ params["w2"].T + params["b2"], 0.0)
    return h2 @ params["w3"].T + params["b3"]


def dqn_reference_bf16(x, arrays, meta):
    """Reference with the same bf16-operand / f32-accumulate numerics as the kernel."""
    S, H, A = meta["state_size"], meta["hidden"], meta["action_size"]
    w1, w2 = arrays["w12"][:S], arrays["w12"][S:]
    w3 = arrays["w3"][:, :A]
    b1 = arrays["biases"][0, :H]
    b2 = arrays["biases"][1, :H]
    b3 = arrays["biases"][2, :A]
    h1 = jnp.maximum(
        jnp.dot(x.astype(jnp.bfloat16), w1, preferred_element_type=jnp.float32) + b1, 0.0)
    h2 = jnp.maximum(
        jnp.dot(h1.astype(jnp.bfloat16), w2, preferred_element_type=jnp.float32) + b2, 0.0)
    return jnp.dot(h2.astype(jnp.bfloat16), w3, preferred_element_type=jnp.float32) + b3


if __name__ == "__main__":
    # Small, Walker-like shapes: observation dim 24, discrete action dim 6.
    batch, state_size, action_size = 8, 24, 6

    key = jax.random.PRNGKey(0)
    kx, kp = jax.random.split(key)
    x = jax.random.normal(kx, (batch, state_size), jnp.float32)
    params = init_dqn_params(kp, state_size, action_size)
    arrays, meta = prepare_dqn_params(params)   # one-time layout (not per forward call)

    out = jax.block_until_ready(dqn_forward(x, arrays, action_size=action_size))
    assert out.shape == (batch, action_size)

    # Tight check against a reference using identical bf16/f32 mixed numerics.
    ref_bf16 = dqn_reference_bf16(x, arrays, meta)
    assert jnp.allclose(out, ref_bf16, atol=1e-3, rtol=1e-3), "mismatch vs bf16 reference"

    # Loose check against the pure-f32 PyTorch-equivalent reference (bf16 MXU inputs).
    ref_f32 = dqn_reference_f32(x, params)
    assert jnp.allclose(out, ref_f32, atol=5e-2, rtol=5e-2), "mismatch vs f32 reference"

    print("KERNEL_OK")
</pallas_src>

<mosaic_0001>
module attributes {stable_mosaic.version = 11 : i64} {
  func.func @dqn_kernel(%arg0: i32, %arg1: memref<8x24xf32, #tpu.memory_space<vmem>>, %arg2: memref<152x128xbf16, #tpu.memory_space<vmem>>, %arg3: memref<128x128xbf16, #tpu.memory_space<vmem>>, %arg4: memref<3x128xf32, #tpu.memory_space<vmem>>, %arg5: memref<8x128xf32, #tpu.memory_space<vmem>>) attributes {dimension_semantics = [#tpu.dimension_semantics<parallel>], iteration_bounds = array<i64: 1>, scalar_prefetch = 0 : i64, scratch_operands = 0 : i64, tpu.core_type = #tpu.core_type<tc>, window_params = [{transform_indices = @transform_0, window_bounds = array<i64: 8, 24>}, {pipeline_mode = #tpu.pipeline_mode<synchronous>, transform_indices = @transform_1, window_bounds = array<i64: 152, 128>}, {pipeline_mode = #tpu.pipeline_mode<synchronous>, transform_indices = @transform_2, window_bounds = array<i64: 128, 128>}, {pipeline_mode = #tpu.pipeline_mode<synchronous>, transform_indices = @transform_3, window_bounds = array<i64: 3, 128>}, {transform_indices = @transform_4, window_bounds = array<i64: 8, 128>}]} {
    %c0 = arith.constant 0 : index
    %c0_0 = arith.constant 0 : index
    %0 = vector.load %arg1[%c0, %c0_0] : memref<8x24xf32, #tpu.memory_space<vmem>>, vector<8x24xf32>
    %1 = arith.truncf %0 : vector<8x24xf32> to vector<8x24xbf16>
    %c0_1 = arith.constant 0 : index
    %c0_2 = arith.constant 0 : index
    %2 = vector.load %arg2[%c0_1, %c0_2] : memref<152x128xbf16, #tpu.memory_space<vmem>>, vector<24x128xbf16>
    %c24 = arith.constant 24 : index
    %c0_3 = arith.constant 0 : index
    %3 = vector.load %arg2[%c24, %c0_3] : memref<152x128xbf16, #tpu.memory_space<vmem>>, vector<128x128xbf16>
    %c0_4 = arith.constant 0 : index
    %c0_5 = arith.constant 0 : index
    %4 = vector.load %arg4[%c0_4, %c0_5] : memref<3x128xf32, #tpu.memory_space<vmem>>, vector<1x128xf32>
    %c1 = arith.constant 1 : index
    %c0_6 = arith.constant 0 : index
    %5 = vector.load %arg4[%c1, %c0_6] : memref<3x128xf32, #tpu.memory_space<vmem>>, vector<1x128xf32>
    %c2 = arith.constant 2 : index
    %c0_7 = arith.constant 0 : index
    %6 = vector.load %arg4[%c2, %c0_7] : memref<3x128xf32, #tpu.memory_space<vmem>>, vector<1x128xf32>
    %cst = arith.constant dense<0.000000e+00> : vector<8x128xf32>
    %7 = tpu.matmul %1, %2, %cst {dimension_numbers = #tpu.dot_dimension_numbers<[1], [0], [0], [1], [0, 0, 1, 1], [], []>} : vector<8x24xbf16>, vector<24x128xbf16>, vector<8x128xf32> -> vector<8x128xf32>
    %8 = vector.broadcast %4 : vector<1x128xf32> to vector<8x128xf32>
    %9 = arith.addf %7, %8 : vector<8x128xf32>
    %cst_8 = arith.constant 0.000000e+00 : f32
    %10 = vector.broadcast %cst_8 : f32 to vector<8x128xf32>
    %11 = arith.maximumf %9, %10 : vector<8x128xf32>
    %12 = arith.truncf %11 : vector<8x128xf32> to vector<8x128xbf16>
    %cst_9 = arith.constant dense<0.000000e+00> : vector<8x128xf32>
    %13 = tpu.matmul %12, %3, %cst_9 {dimension_numbers = #tpu.dot_dimension_numbers<[1], [0], [0], [1], [0, 0, 1, 1], [], []>} : vector<8x128xbf16>, vector<128x128xbf16>, vector<8x128xf32> -> vector<8x128xf32>
    %14 = vector.broadcast %5 : vector<1x128xf32> to vector<8x128xf32>
    %15 = arith.addf %13, %14 : vector<8x128xf32>
    %cst_10 = arith.constant 0.000000e+00 : f32
    %16 = vector.broadcast %cst_10 : f32 to vector<8x128xf32>
    %17 = arith.maximumf %15, %16 : vector<8x128xf32>
    %18 = arith.truncf %17 : vector<8x128xf32> to vector<8x128xbf16>
    %c0_11 = arith.constant 0 : index
    %c0_12 = arith.constant 0 : index
    %19 = vector.load %arg3[%c0_11, %c0_12] : memref<128x128xbf16, #tpu.memory_space<vmem>>, vector<128x128xbf16>
    %cst_13 = arith.constant dense<0.000000e+00> : vector<8x128xf32>
    %20 = tpu.matmul %18, %19, %cst_13 {dimension_numbers = #tpu.dot_dimension_numbers<[1], [0], [0], [1], [0, 0, 1, 1], [], []>} : vector<8x128xbf16>, vector<128x128xbf16>, vector<8x128xf32> -> vector<8x128xf32>
    %21 = vector.broadcast %6 : vector<1x128xf32> to vector<8x128xf32>
    %22 = arith.addf %20, %21 : vector<8x128xf32>
    %c0_14 = arith.constant 0 : index
    %c0_15 = arith.constant 0 : index
    %23 = vector.load %arg5[%c0_14, %c0_15] : memref<8x128xf32, #tpu.memory_space<vmem>>, vector<8x128xf32>
    tpu.vector_store %arg5[%c0_14, %c0_15], %22 {strides = array<i32>} : memref<8x128xf32, #tpu.memory_space<vmem>>, vector<8x128xf32>,
    return
  }
  func.func @transform_0(%arg0: i32) -> (i32, i32) {
    %c0_i32 = arith.constant 0 : i32
    %c0_i32_0 = arith.constant 0 : i32
    return %arg0, %c0_i32 : i32, i32
  }
  func.func @transform_1(%arg0: i32) -> (i32, i32) {
    %c0_i32 = arith.constant 0 : i32
    %c0_i32_0 = arith.constant 0 : i32
    %c0_i32_1 = arith.constant 0 : i32
    return %c0_i32, %c0_i32_0 : i32, i32
  }
  func.func @transform_2(%arg0: i32) -> (i32, i32) {
    %c0_i32 = arith.constant 0 : i32
    %c0_i32_0 = arith.constant 0 : i32
    %c0_i32_1 = arith.constant 0 : i32
    return %c0_i32, %c0_i32_0 : i32, i32
  }
  func.func @transform_3(%arg0: i32) -> (i32, i32) {
    %c0_i32 = arith.constant 0 : i32
    %c0_i32_0 = arith.constant 0 : i32
    %c0_i32_1 = arith.constant 0 : i32
    return %c0_i32, %c0_i32_0 : i32, i32
  }
  func.func @transform_4(%arg0: i32) -> (i32, i32) {
    %c0_i32 = arith.constant 0 : i32
    %c0_i32_0 = arith.constant 0 : i32
    return %arg0, %c0_i32 : i32, i32
  }
}

</mosaic_0001>

<bundles_post_ra>
// kernel: dqn_forward.1
= control target key start
LH: loop header
LB: loop body
LE: loop exit
PB: predicated region body
PF: predicated region fallthrough
CT: control target
= control target key end

     0   :  { %9 = vsyncpa [#allocation3], 0  ;;  %s737_s0 = inlined_call_operand.hbm [shape: f32[8,24], index: 0, kind: input, shape index: {}]   ;;  %s738_s1 = inlined_call_operand.hbm [shape: bf16[152,128], index: 1, kind: input, shape index: {}]   ;;  %s739_s2 = inlined_call_operand.hbm [shape: bf16[128,128], index: 2, kind: input, shape index: {}]   ;;  %s740_s3 = inlined_call_operand.hbm [shape: f32[3,128], index: 3, kind: input, shape index: {}]   ;;  %s741_s4 = inlined_call_operand.hbm [shape: f32[8,128], index: 4, kind: output, shape index: {}]  }
   0x1   :  { %10 = vsyncpa [#allocation6], 0 }
   0x2   :  { %11 = vsyncpa [#allocation9], 0 }
   0x3   :  { %12 = vsyncpa [#allocation4], 0  ;;  %s613_s15 = smov [#allocation5]   ;;  %s495_s19 = scalar_lea.hbm %s738_s1, 1216 }
   0x4   :  { %s28_s16 = sshll.u32 %s613_s15, 4  ;;  %p496_p0 = scmp.ne.s32.totalorder %s738_s1, %s495_s19  ;;  %s29_s16 = int_to_ptr.vmem [resolvable:$true] %s28_s16 }
   0x5   :  { %p499_p1 = scmp.lt.u32.totalorder %s495_s19, %s738_s1 }
   0x7   :  { %p501_p2 = pnand %p499_p1, %p496_p0 }
   0x9   :  { %504 = shalt.err (!%p501_p2)
}
   0xa   :  { %s505_s24 = scalar_lea.vmem %s29_s16, 1216  ;;  %p510_p4 = scmp.lt.s32.totalorder %s29_s16, %s29_s16 }
   0xb   :  { %p506_p3 = scmp.ne.s32.totalorder %s29_s16, %s505_s24  ;;  %p511_p5 = scmp.lt.s32.totalorder %s505_s24, %s505_s24 }
   0xd   :  { %p512_p6 = por %p511_p5, %p510_p4 }
   0xf   :  { %p513_p7 = pnand %p512_p6, %p506_p3 }
  0x11   :  { %516 = shalt.err (!%p513_p7)
}
  0x12   :  { %s614_s25 = smov 64   ;;  %s615_s26 = smov 4  }
  0x13   :  { %34 = dma.hbm_to_vmem [thread:$0]  %s738_s1, 1216, %s29_s16, [#allocation6], %s614_s25, %s614_s25, %s615_s26  }
  0x14   :  { %s616_s29 = smov [#allocation2]   ;;  %s617_s5 = smov [#allocation7]  }
  0x15   :  { %s19_s30 = sshll.u32 %s616_s29, 4  ;;  %s40_s6 = sshll.u32 %s617_s5, 4  ;;  %s20_s30 = int_to_ptr.vmem [resolvable:$true] %s19_s30  ;;  %s41_s6 = int_to_ptr.vmem [resolvable:$true] %s40_s6 }
  0x16   :  { %s517_s9 = scalar_lea.hbm %s737_s0, 128 }
  0x17   :  { %p518_p8 = scmp.ne.s32.totalorder %s737_s0, %s517_s9  ;;  %p521_p9 = scmp.lt.u32.totalorder %s517_s9, %s737_s0 }
  0x19   :  { %p523_p10 = pnand %p521_p9, %p518_p8 }
  0x1b   :  { %526 = shalt.err (!%p523_p10)
}
  0x1c   :  { %s527_s1 = scalar_lea.vmem %s20_s30, 128  ;;  %p532_p12 = scmp.lt.s32.totalorder %s20_s30, %s20_s30 }
  0x1d   :  { %p528_p11 = scmp.ne.s32.totalorder %s20_s30, %s527_s1  ;;  %p533_p13 = scmp.lt.s32.totalorder %s527_s1, %s527_s1 }
  0x1f   :  { %p534_p0 = por %p533_p13, %p532_p12 }
  0x21   :  { %p535_p1 = pnand %p534_p0, %p528_p11 }
  0x23   :  { %538 = shalt.err (!%p535_p1)
}
  0x24   :  { %22 = dma.hbm_to_vmem [thread:$0]  %s737_s0, 128, %s20_s30, [#allocation3]  }
  0x25   :  { %s539_s18 = scalar_lea.hbm %s739_s2, 1024 }
  0x26   :  { %p540_p2 = scmp.ne.s32.totalorder %s739_s2, %s539_s18  ;;  %p543_p3 = scmp.lt.u32.totalorder %s539_s18, %s739_s2 }
  0x28   :  { %p545_p4 = pnand %p543_p3, %p540_p2 }
  0x2a   :  { %548 = shalt.err (!%p545_p4)
}
  0x2b   :  { %s549_s23 = scalar_lea.vmem %s41_s6, 1024  ;;  %p554_p6 = scmp.lt.s32.totalorder %s41_s6, %s41_s6 }
  0x2c   :  { %p550_p5 = scmp.ne.s32.totalorder %s41_s6, %s549_s23  ;;  %p555_p7 = scmp.lt.s32.totalorder %s549_s23, %s549_s23 }
  0x2e   :  { %p556_p8 = por %p555_p7, %p554_p6 }
  0x30   :  { %p557_p9 = pnand %p556_p8, %p550_p5 }
  0x32   :  { %560 = shalt.err (!%p557_p9)
}
  0x33   :  { %46 = dma.hbm_to_vmem [thread:$0]  %s739_s2, 1024, %s41_s6, [#allocation6], %s614_s25, %s614_s25, %s615_s26  }
  0x34   :  { %s618_s27 = smov [#allocation8]   ;;  %s561_s5 = scalar_lea.hbm %s740_s3, 64 }
  0x35   :  { %s53_s28 = sshll.u32 %s618_s27, 4  ;;  %p562_p10 = scmp.ne.s32.totalorder %s740_s3, %s561_s5  ;;  %s54_s28 = int_to_ptr.vmem [resolvable:$true] %s53_s28 }
  0x36   :  { %p565_p11 = scmp.lt.u32.totalorder %s561_s5, %s740_s3 }
  0x38   :  { %p567_p12 = pnand %p565_p11, %p562_p10 }
  0x3a   :  { %570 = shalt.err (!%p567_p12)
}
  0x3b   :  { %s571_s11 = scalar_lea.vmem %s54_s28, 64  ;;  %p576_p0 = scmp.lt.s32.totalorder %s54_s28, %s54_s28 }
  0x3c   :  { %p572_p13 = scmp.ne.s32.totalorder %s54_s28, %s571_s11  ;;  %p577_p1 = scmp.lt.s32.totalorder %s571_s11, %s571_s11 }
  0x3e   :  { %p578_p2 = por %p577_p1, %p576_p0 }
  0x40   :  { %p579_p3 = pnand %p578_p2, %p572_p13 }
  0x42   :  { %582 = shalt.err (!%p579_p3)
}
  0x43   :  { %56 = dma.hbm_to_vmem [thread:$0]  %s740_s3, 64, %s54_s28, [#allocation9]  }
  0x44   :  { %605 = dma.done.wait [#allocation3], 128  }
  0x45   :  { %606 = vsyncadd [#allocation3], 4294967168 }
  0x46   :  { %607 = dma.done.wait [#allocation6], 2240  }
  0x47   :  { %608 = vsyncadd [#allocation6], 4294965056 }
  0x48   :  { %609 = dma.done.wait [#allocation9], 64  }
  0x49   :  { %610 = vsyncadd [#allocation9], 4294967232  ;;  %v619_v0 = vmov 0.0   ;;  %vm620_vm0 = vmmov 0   ;;  %v477_v1 = vld [vmem:[#allocation5] sm:$0xff]   ;;  %vm111_vm1 = vcmask 1043456  }
  0x4a   :  { %420 = vmatprep.subr.bf16.mxu0 %v619_v0  ;;  %424 = vmatprep.mubr.msk.bf16.mxu0 %vm620_vm0, %v619_v0  ;;  %v478_v2 = vld [vmem:[#allocation5 + $0x8] ss:$0 sps:$4 sm:$0xff]   ;;  %v70_v3 = vld [vmem:[#allocation2] sm:$0xff]  ;;  %v479_v4 = vld [vmem:[#allocation5 + $0xc] sm:$0xff]   ;;  %vm107_vm2 = vcmask 195584   ;;  %s621_s3 = smov [#allocation10]  }
  0x4b   :  { %428 = vmatprep.subr.bf16.mxu1 %v619_v0  ;;  %444 = vmatprep.mubr.msk.bf16.mxu1 %vm620_vm0, %v619_v0  ;;  %v113_v5 = vsel %vm111_vm1, %v478_v2, 0  ;;  %v480_v6 = vld [vmem:[#allocation5 + $0x14] sm:$0xff]   ;;  %v71_v7 = vpack.c.bf16 %v70_v3, %v70_v3  ;;  %v481_v8 = vld [vmem:[#allocation5 + $0x1c] sm:$0xff]   ;;  %v482_v9 = vld [vmem:[#allocation5 + $0x24] sm:$0xff]   ;;  %s366_s26 = sshll.u32 %s621_s3, 4  ;;  %s367_s26 = int_to_ptr.vmem [resolvable:$true] %s366_s26 }
  0x4c   :  { %421 = vmatpush3.bf16.msra.mxu0 %v477_v1  ;;  %429 = vmatpush3.bf16.msra.mxu1 %v479_v4  ;;  %v483_v10 = vld [vmem:[#allocation5 + $0x2c] sm:$0xff]   ;;  %v484_v11 = vld [vmem:[#allocation5 + $0x34] sm:$0xff]   ;;  %v485_v12 = vld [vmem:[#allocation5 + $0x3c] sm:$0xff]   ;;  %s583_s6 = scalar_lea.vmem %s367_s26, 128  ;;  %p588_p5 = scmp.lt.s32.totalorder %s367_s26, %s367_s26 }
  0x4d   :  { %422 = vmatprep.subr.bf16.mxu0 %v619_v0  ;;  %430 = vmatprep.subr.bf16.mxu1 %v619_v0  ;;  %v486_v13 = vld [vmem:[#allocation5 + $0x44] sm:$0xff]   ;;  %v487_v14 = vld [vmem:[#allocation7] sm:$0xff]   ;;  %v488_v15 = vld [vmem:[#allocation7 + $0x8] sm:$0xff]   ;;  %p584_p4 = scmp.ne.s32.totalorder %s367_s26, %s583_s6  ;;  %p589_p6 = scmp.lt.s32.totalorder %s583_s6, %s583_s6 }
  0x4e   :  { %v489_v16 = vld [vmem:[#allocation7 + $0x10] sm:$0xff]   ;;  %v490_v17 = vld [vmem:[#allocation7 + $0x18] sm:$0xff]   ;;  %v491_v18 = vld [vmem:[#allocation7 + $0x20] sm:$0xff]  }
  0x4f   :  { %v492_v19 = vld [vmem:[#allocation7 + $0x28] sm:$0xff]   ;;  %v377_v20 = vld [vmem:[#allocation8] ss:$0 sm:$0xff]  ;;  %v493_v28 = vld [vmem:[#allocation7 + $0x30] sm:$0xff]   ;;  %p590_p7 = por %p589_p6, %p588_p5 }
  0x50   :  { %423 = vmatpush3.bf16.msra.mxu0 %v113_v5  ;;  %431 = vmatpush3.bf16.msra.mxu1 %v480_v6  ;;  %v494_v29 = vld [vmem:[#allocation7 + $0x38] sm:$0xff]   ;;  %v381_v30 = vld [vmem:[#allocation8 + $0x1] ss:$0 sm:$0xff]  ;;  %v390_v38 = vld [vmem:[#allocation8 + $0x2] ss:$0 sm:$0xff] }
  0x51   :  { %448 = vmatprep.subr.bf16.mxu0 %v619_v0  ;;  %432 = vmatprep.subr.bf16.mxu1 %v619_v0  ;;  %p591_p8 = pnand %p590_p7, %p584_p4 }
  0x53   :  { %425 = vmatmul.mubr.msk.bf16.vlgmr.msra.gmra.mrb[0].mxu0 %vm107_vm2, %v71_v7 }
  0x54   :  { %464 = vmatprep.mubr.msk.bf16.mxu0 %vm620_vm0, %v619_v0  ;;  %433 = vmatpush3.bf16.msra.mxu1 %v481_v8 }
  0x55   :  { %434 = vmatprep.subr.bf16.mxu1 %v619_v0  ;;  %449 = vmatpush3.bf16.msra.mxu0 %v487_v14 }
  0x56   :  { %450 = vmatprep.subr.bf16.mxu0 %v619_v0 }
  0x58   :  { %435 = vmatpush3.bf16.msra.mxu1 %v482_v9 }
  0x59   :  { %436 = vmatprep.subr.bf16.mxu1 %v619_v0  ;;  %451 = vmatpush3.bf16.msra.mxu0 %v488_v15 }
  0x5a   :  { %452 = vmatprep.subr.bf16.mxu0 %v619_v0 }
  0x5c   :  { %437 = vmatpush3.bf16.msra.mxu1 %v483_v10 }
  0x5d   :  { %438 = vmatprep.subr.bf16.mxu1 %v619_v0  ;;  %453 = vmatpush3.bf16.msra.mxu0 %v489_v16 }
  0x5e   :  { %454 = vmatprep.subr.bf16.mxu0 %v619_v0 }
  0x60   :  { %439 = vmatpush3.bf16.msra.mxu1 %v484_v11 }
  0x61   :  { %440 = vmatprep.subr.bf16.mxu1 %v619_v0  ;;  %455 = vmatpush3.bf16.msra.mxu0 %v490_v17 }
  0x62   :  { %456 = vmatprep.subr.bf16.mxu0 %v619_v0 }
  0x64   :  { %441 = vmatpush3.bf16.msra.mxu1 %v485_v12 }
  0x65   :  { %442 = vmatprep.subr.bf16.mxu1 %v619_v0  ;;  %457 = vmatpush3.bf16.msra.mxu0 %v491_v18 }
  0x66   :  { %458 = vmatprep.subr.bf16.mxu0 %v619_v0 }
  0x68   :  { %443 = vmatpush3.bf16.msra.mxu1 %v486_v13 }
  0x69   :  { %459 = vmatpush3.bf16.msra.mxu0 %v492_v19 }
  0x6a   :  { %460 = vmatprep.subr.bf16.mxu0 %v619_v0 }
  0x6d   :  { %461 = vmatpush3.bf16.msra.mxu0 %v493_v28 }
  0x6e   :  { %462 = vmatprep.subr.bf16.mxu0 %v619_v0 }
  0x71   :  { %463 = vmatpush3.bf16.msra.mxu0 %v494_v29 }
 0x126   :  { %v149_v21 = vpop.f32.mrb[0].mxu0 }
 0x127   :  { %v150_v22 = vadd.f32 %v377_v20, %v149_v21  ;;  %v426_v23 = vpop.f32.mrb[1].mxu0 }
 0x128   :  { %v152_v24 = vpop.f32.mrb[2].mxu0 }
 0x129   :  { %v155_v25 = vmax.f32 %v150_v22, 0.0  ;;  %v427_v26 = vpop.f32.mrb[3].mxu0 }
 0x12b   :  { %v156_v27 = vpack.c.bf16 %v155_v25, %v155_v25 }
 0x12d   :  { %445 = vmatmul.mubr.bf16.vlgmr.msra.gmra.mrb[0].mxu1 %v156_v27 }
 0x200   :  { %v243_v31 = vpop.f32.mrb[0].mxu1 }
 0x201   :  { %v244_v32 = vadd.f32 %v381_v30, %v243_v31  ;;  %v446_v33 = vpop.f32.mrb[1].mxu1 }
 0x202   :  { %v246_v34 = vpop.f32.mrb[2].mxu1 }
 0x203   :  { %v249_v35 = vmax.f32 %v244_v32, 0.0  ;;  %v447_v36 = vpop.f32.mrb[3].mxu1 }
 0x205   :  { %v250_v37 = vpack.c.bf16 %v249_v35, %v249_v35 }
 0x207   :  { %465 = vmatmul.mubr.bf16.vlgmr.msra.gmra.mrb[4].mxu0 %v250_v37 }
 0x2da   :  { %v353_v39 = vpop.f32.mrb[4].mxu0 }
 0x2db   :  { %v354_v40 = vadd.f32 %v390_v38, %v353_v39  ;;  %v466_v41 = vpop.f32.mrb[5].mxu0 }
 0x2dc   :  { %v356_v42 = vpop.f32.mrb[6].mxu0 }
 0x2dd   :  { %359 = vst [vmem:[#allocation10] sm:$0xff] %v354_v40  ;;  %v467_v43 = vpop.f32.mrb[7].mxu0 }
 0x2de   :  { %594 = shalt.err (!%p591_p8)
}
 0x2df   :  { %s595_s1 = scalar_lea.hbm %s741_s4, 128 }
 0x2e0   :  { %p596_p9 = scmp.ne.s32.totalorder %s741_s4, %s595_s1  ;;  %p599_p10 = scmp.lt.u32.totalorder %s595_s1, %s741_s4 }
 0x2e2   :  { %p601_p11 = pnand %p599_p10, %p596_p9 }
 0x2e4   :  { %604 = shalt.err (!%p601_p11)
}
 0x2e5   :  { %369 = dma.vmem_to_hbm [thread:$0]  %s367_s26, 128, %s741_s4, [#allocation4]  }
 0x2e6   :  { %611 = dma.done.wait [#allocation4], 128  }
 0x2e7   :  { %612 = vsyncadd [#allocation4], 4294967168 }
 0x2e8   :  { %373 = vsyncpa [#allocation3], 1 }
 0x2e9   :  { %374 = vsyncpa [#allocation6], 1 }
 0x2ea   :  { %375 = vsyncpa [#allocation9], 1 }
 0x2eb   :  { %376 = vsyncpa [#allocation4], 1 }

</bundles_post_ra>
